<compile_context>
chip_gen: v6e
topology: v6e:2x2x1
jax: 0.10.0
libtpu: 0.0.40
codegen_flags: <defaults>
</compile_context>

<pallas_src>
import math

import jax
import jax.numpy as jnp
from jax import lax
from jax.experimental import pallas as pl
from jax.experimental.pallas import tpu as pltpu

LN_EPS = 1e-5
INV_SQRT2 = 1.0 / math.sqrt(2.0)


def _attention_pool_kernel(x_ref, mask_ref, w1_ref, b1_ref, gamma_ref, beta_ref,
                           w2_ref, b2_ref, out_ref):
    BT, S, D = x_ref.shape

    x3 = x_ref[...].astype(jnp.float32)                     # (BT, S, D) f32
    x2 = x3.reshape(BT * S, D)                               # tall LHS for the MXU

    # ---- Linear(in_dim, in_dim): bf16 operands, f32 accumulation on the MXU
    h = jnp.dot(x2.astype(w1_ref.dtype), w1_ref[...],
                preferred_element_type=jnp.float32)
    h = h + b1_ref[...]                                      # (BT*S, D)

    # ---- LayerNorm over last dim (f32)
    mu = jnp.mean(h, axis=-1, keepdims=True)
    var = jnp.mean((h - mu) * (h - mu), axis=-1, keepdims=True)
    hn = (h - mu) * lax.rsqrt(var + LN_EPS)
    hn = hn * gamma_ref[...] + beta_ref[...]

    # ---- GELU (exact erf form -- matches torch.nn.GELU default)
    g = 0.5 * hn * (1.0 + lax.erf(hn * INV_SQRT2))

    # ---- Linear(in_dim, 1): lane-dense logits (BT, S) via multiply + lane reduce
    g3 = g.reshape(BT, S, D)
    logits = jnp.sum(g3 * w2_ref[...].reshape(1, 1, D), axis=-1) + b2_ref[0]  # (BT, S)

    # ---- mask: attention_mask == 0 -> -inf
    logits = jnp.where(mask_ref[...] == 0.0, -jnp.inf, logits)

    # ---- softmax over the sequence axis (last axis = lanes)
    m = jnp.max(logits, axis=-1, keepdims=True)              # (BT, 1)
    p = jnp.exp(logits - m)                                   # masked positions -> 0
    denom = jnp.sum(p, axis=-1, keepdims=True)
    w = p / denom                                             # (BT, S)

    # ---- weighted sum over sequence (VPU multiply + reduce over S)
    out_ref[...] = jnp.sum(w[:, :, None] * x3, axis=1)        # (BT, D) f32


def _vmem_limit_bytes(BT, S, D):
    x_tile = BT * S * D * 4
    out_tile = BT * D * 4
    mask_tile = BT * S * 4
    w1 = D * D * 2                      # bf16 resident weights
    small = 4 * D * 4 + 16
    temps = 5 * BT * S * D * 4          # f32 intermediates (h, hn, g, w*x, ...)
    need = 2 * (x_tile + out_tile + mask_tile + small) + 2 * w1 + temps
    need = int(need * 1.25)
    return int(min(max(need, 32 * 1024 * 1024), 64 * 1024 * 1024))


def attention_pooling(x, attention_mask, params, *, block_b=8):
    """x: [B, S, D], attention_mask: [B, S] (1 keep / 0 mask). Returns [B, D] float32."""
    B, S, D = x.shape
    w1, b1, gamma, beta, w2, b2 = params

    BT = min(block_b, B)
    B_pad = ((B + BT - 1) // BT) * BT

    x_f = x.astype(jnp.float32)
    mask_f = attention_mask.astype(jnp.float32)
    if B_pad != B:
        pad = B_pad - B
        x_f = jnp.pad(x_f, ((0, pad), (0, 0), (0, 0)))
        # pad mask with ones so padded rows stay finite (they are sliced off below)
        mask_f = jnp.pad(mask_f, ((0, pad), (0, 0)), constant_values=1.0)

    # glue: pre-transpose W1 to (in, out) and cast to bf16 for the MXU; keep the
    # rest in f32; w2 as a lane-dense (1, D) row; b2 as an SMEM scalar.
    w1_t = w1.T.astype(jnp.bfloat16)                         # (D, D)
    b1_2d = b1.reshape(1, D).astype(jnp.float32)
    gamma_2d = gamma.reshape(1, D).astype(jnp.float32)
    beta_2d = beta.reshape(1, D).astype(jnp.float32)
    w2_row = w2.reshape(1, D).astype(jnp.float32)
    b2_1d = b2.reshape(1).astype(jnp.float32)

    grid = (B_pad // BT,)

    out = pl.pallas_call(
        _attention_pool_kernel,
        out_shape=jax.ShapeDtypeStruct((B_pad, D), jnp.float32),
        grid_spec=pltpu.PrefetchScalarGridSpec(
            num_scalar_prefetch=0,
            grid=grid,
            in_specs=[
                pl.BlockSpec((BT, S, D), lambda i: (i, 0, 0)),   # x tile
                pl.BlockSpec((BT, S), lambda i: (i, 0)),          # mask tile (lane-dense)
                pl.BlockSpec((D, D), lambda i: (0, 0)),           # W1^T (bf16, resident)
                pl.BlockSpec((1, D), lambda i: (0, 0)),           # b1
                pl.BlockSpec((1, D), lambda i: (0, 0)),           # gamma
                pl.BlockSpec((1, D), lambda i: (0, 0)),           # beta
                pl.BlockSpec((1, D), lambda i: (0, 0)),           # w2 row
                pl.BlockSpec(memory_space=pltpu.MemorySpace.SMEM),  # b2 scalar
            ],
            out_specs=pl.BlockSpec((BT, D), lambda i: (i, 0)),
        ),
        compiler_params=pltpu.CompilerParams(
            dimension_semantics=("parallel",),
            vmem_limit_bytes=_vmem_limit_bytes(BT, S, D)),
    )(x_f, mask_f, w1_t, b1_2d, gamma_2d, beta_2d, w2_row, b2_1d)

    return out[:B]


def _reference(x, attention_mask, params):
    # Mirrors the kernel numerics: bf16 MXU inputs with f32 accumulation for the
    # first Linear; everything else in f32. (Pure-f32 differs only at ~1e-3.)
    w1, b1, gamma, beta, w2, b2 = params
    h = jnp.dot(x.astype(jnp.bfloat16), w1.T.astype(jnp.bfloat16),
                preferred_element_type=jnp.float32) + b1
    mu = jnp.mean(h, axis=-1, keepdims=True)
    var = jnp.mean((h - mu) ** 2, axis=-1, keepdims=True)
    hn = (h - mu) / jnp.sqrt(var + LN_EPS) * gamma + beta
    g = 0.5 * hn * (1.0 + lax.erf(hn * INV_SQRT2))
    logits = (g @ w2.reshape(-1, 1) + b2).astype(jnp.float32)        # (B, S, 1)
    logits = jnp.where(attention_mask[..., None] == 0, float("-inf"), logits)
    w = jax.nn.softmax(logits, axis=1)
    return jnp.sum(w * x, axis=1)


if __name__ == "__main__":
    B, S, D = 2, 8, 32
    key = jax.random.PRNGKey(0)
    k_x, k_w1, k_b1, k_w2, k_b2 = jax.random.split(key, 5)

    x = jax.random.normal(k_x, (B, S, D), dtype=jnp.float32)
    # deterministic mask: mask out the last 3 positions of batch 1
    attention_mask = jnp.ones((B, S), dtype=jnp.int32).at[1, -3:].set(0)
    # NOTE: a fully-masked row yields NaN (same as the PyTorch reference).

    # deterministic parameter init (shapes per nn.Linear / nn.LayerNorm in __init__)
    w1 = jax.random.normal(k_w1, (D, D), dtype=jnp.float32) * 0.1    # Linear(in,in).weight (out,in)
    b1 = jax.random.normal(k_b1, (D,), dtype=jnp.float32) * 0.1      # Linear(in,in).bias
    gamma = jnp.ones((D,), dtype=jnp.float32)                        # LayerNorm.weight
    beta = jnp.zeros((D,), dtype=jnp.float32)                        # LayerNorm.bias
    w2 = jax.random.normal(k_w2, (1, D), dtype=jnp.float32) * 0.1    # Linear(in,1).weight
    b2 = jax.random.normal(k_b2, (1,), dtype=jnp.float32) * 0.1      # Linear(in,1).bias
    params = (w1, b1, gamma, beta, w2, b2)

    out = attention_pooling(x, attention_mask, params)
    out = jax.block_until_ready(out)

    ref = _reference(x, attention_mask, params)
    assert out.shape == (B, D)
    assert jnp.allclose(out, ref, rtol=1e-3, atol=1e-3), "mismatch vs reference"

    print("KERNEL_OK")
</pallas_src>

<mosaic_0001>
module attributes {stable_mosaic.version = 11 : i64} {
  func.func @_attention_pool_kernel(%arg0: i32, %arg1: memref<2x8x32xf32, #tpu.memory_space<vmem>>, %arg2: memref<2x8xf32, #tpu.memory_space<vmem>>, %arg3: memref<32x32xbf16, #tpu.memory_space<vmem>>, %arg4: memref<1x32xf32, #tpu.memory_space<vmem>>, %arg5: memref<1x32xf32, #tpu.memory_space<vmem>>, %arg6: memref<1x32xf32, #tpu.memory_space<vmem>>, %arg7: memref<1x32xf32, #tpu.memory_space<vmem>>, %arg8: memref<1xf32, #tpu.memory_space<smem>>, %arg9: memref<2x32xf32, #tpu.memory_space<vmem>>) attributes {dimension_semantics = [#tpu.dimension_semantics<parallel>], iteration_bounds = array<i64: 1>, scalar_prefetch = 0 : i64, scratch_operands = 0 : i64, tpu.core_type = #tpu.core_type<tc>, window_params = [{transform_indices = @transform_0, window_bounds = array<i64: 2, 8, 32>}, {transform_indices = @transform_1, window_bounds = array<i64: 2, 8>}, {pipeline_mode = #tpu.pipeline_mode<synchronous>, transform_indices = @transform_2, window_bounds = array<i64: 32, 32>}, {pipeline_mode = #tpu.pipeline_mode<synchronous>, transform_indices = @transform_3, window_bounds = array<i64: 1, 32>}, {pipeline_mode = #tpu.pipeline_mode<synchronous>, transform_indices = @transform_4, window_bounds = array<i64: 1, 32>}, {pipeline_mode = #tpu.pipeline_mode<synchronous>, transform_indices = @transform_5, window_bounds = array<i64: 1, 32>}, {pipeline_mode = #tpu.pipeline_mode<synchronous>, transform_indices = @transform_6, window_bounds = array<i64: 1, 32>}, {transform_indices = @transform_7, window_bounds = array<i64: 1>}, {transform_indices = @transform_8, window_bounds = array<i64: 2, 32>}]} {
    %c0 = arith.constant 0 : index
    %c0_0 = arith.constant 0 : index
    %c0_1 = arith.constant 0 : index
    %0 = vector.load %arg1[%c0, %c0_0, %c0_1] : memref<2x8x32xf32, #tpu.memory_space<vmem>>, vector<2x8x32xf32>
    %1 = vector.shape_cast %0 : vector<2x8x32xf32> to vector<16x32xf32>
    %2 = arith.truncf %1 : vector<16x32xf32> to vector<16x32xbf16>
    %c0_2 = arith.constant 0 : index
    %c0_3 = arith.constant 0 : index
    %3 = vector.load %arg3[%c0_2, %c0_3] : memref<32x32xbf16, #tpu.memory_space<vmem>>, vector<32x32xbf16>
    %cst = arith.constant dense<0.000000e+00> : vector<16x32xf32>
    %4 = tpu.matmul %2, %3, %cst {dimension_numbers = #tpu.dot_dimension_numbers<[1], [0], [0], [1], [0, 0, 1, 1], [], []>} : vector<16x32xbf16>, vector<32x32xbf16>, vector<16x32xf32> -> vector<16x32xf32>
    %c0_4 = arith.constant 0 : index
    %c0_5 = arith.constant 0 : index
    %5 = vector.load %arg4[%c0_4, %c0_5] : memref<1x32xf32, #tpu.memory_space<vmem>>, vector<1x32xf32>
    %6 = vector.broadcast %5 : vector<1x32xf32> to vector<16x32xf32>
    %7 = arith.addf %4, %6 : vector<16x32xf32>
    %cst_6 = arith.constant dense<0.000000e+00> : vector<16xf32>
    %8 = vector.multi_reduction <add>, %7, %cst_6 [1] : vector<16x32xf32> to vector<16xf32>
    %9 = vector.shape_cast %8 : vector<16xf32> to vector<16x1xf32>
    %cst_7 = arith.constant 3.200000e+01 : f32
    %10 = vector.broadcast %cst_7 : f32 to vector<16x1xf32>
    %11 = arith.divf %9, %10 : vector<16x1xf32>
    %12 = vector.broadcast %11 : vector<16x1xf32> to vector<16x32xf32>
    %13 = arith.subf %7, %12 : vector<16x32xf32>
    %14 = vector.broadcast %11 : vector<16x1xf32> to vector<16x32xf32>
    %15 = arith.subf %7, %14 : vector<16x32xf32>
    %16 = arith.mulf %13, %15 : vector<16x32xf32>
    %cst_8 = arith.constant dense<0.000000e+00> : vector<16xf32>
    %17 = vector.multi_reduction <add>, %16, %cst_8 [1] : vector<16x32xf32> to vector<16xf32>
    %18 = vector.shape_cast %17 : vector<16xf32> to vector<16x1xf32>
    %cst_9 = arith.constant 3.200000e+01 : f32
    %19 = vector.broadcast %cst_9 : f32 to vector<16x1xf32>
    %20 = arith.divf %18, %19 : vector<16x1xf32>
    %21 = vector.broadcast %11 : vector<16x1xf32> to vector<16x32xf32>
    %22 = arith.subf %7, %21 : vector<16x32xf32>
    %cst_10 = arith.constant 9.99999974E-6 : f32
    %23 = vector.broadcast %cst_10 : f32 to vector<16x1xf32>
    %24 = arith.addf %20, %23 : vector<16x1xf32>
    %25 = math.rsqrt %24 : vector<16x1xf32>
    %26 = vector.broadcast %25 : vector<16x1xf32> to vector<16x32xf32>
    %27 = arith.mulf %22, %26 : vector<16x32xf32>
    %c0_11 = arith.constant 0 : index
    %c0_12 = arith.constant 0 : index
    %28 = vector.load %arg5[%c0_11, %c0_12] : memref<1x32xf32, #tpu.memory_space<vmem>>, vector<1x32xf32>
    %29 = vector.broadcast %28 : vector<1x32xf32> to vector<16x32xf32>
    %30 = arith.mulf %27, %29 : vector<16x32xf32>
    %c0_13 = arith.constant 0 : index
    %c0_14 = arith.constant 0 : index
    %31 = vector.load %arg6[%c0_13, %c0_14] : memref<1x32xf32, #tpu.memory_space<vmem>>, vector<1x32xf32>
    %32 = vector.broadcast %31 : vector<1x32xf32> to vector<16x32xf32>
    %33 = arith.addf %30, %32 : vector<16x32xf32>
    %cst_15 = arith.constant 5.000000e-01 : f32
    %34 = vector.broadcast %cst_15 : f32 to vector<16x32xf32>
    %35 = arith.mulf %34, %33 : vector<16x32xf32>
    %cst_16 = arith.constant 0.707106769 : f32
    %36 = vector.broadcast %cst_16 : f32 to vector<16x32xf32>
    %37 = arith.mulf %33, %36 : vector<16x32xf32>
    %38 = math.erf %37 : vector<16x32xf32>
    %cst_17 = arith.constant 1.000000e+00 : f32
    %39 = vector.broadcast %cst_17 : f32 to vector<16x32xf32>
    %40 = arith.addf %39, %38 : vector<16x32xf32>
    %41 = arith.mulf %35, %40 : vector<16x32xf32>
    %42 = vector.shape_cast %41 : vector<16x32xf32> to vector<2x8x32xf32>
    %c0_18 = arith.constant 0 : index
    %c0_19 = arith.constant 0 : index
    %43 = vector.load %arg7[%c0_18, %c0_19] : memref<1x32xf32, #tpu.memory_space<vmem>>, vector<1x32xf32>
    %44 = vector.shape_cast %43 : vector<1x32xf32> to vector<1x1x32xf32>
    %45 = vector.broadcast %44 : vector<1x1x32xf32> to vector<2x8x32xf32>
    %46 = arith.mulf %42, %45 : vector<2x8x32xf32>
    %cst_20 = arith.constant dense<0.000000e+00> : vector<2x8xf32>
    %47 = vector.multi_reduction <add>, %46, %cst_20 [2] : vector<2x8x32xf32> to vector<2x8xf32>
    %c0_21 = arith.constant 0 : index
    %48 = memref.load %arg8[%c0_21] : memref<1xf32, #tpu.memory_space<smem>>
    %49 = vector.broadcast %48 : f32 to vector<2x8xf32>
    %50 = arith.addf %47, %49 : vector<2x8xf32>
    %c0_22 = arith.constant 0 : index
    %c0_23 = arith.constant 0 : index
    %51 = vector.load %arg2[%c0_22, %c0_23] : memref<2x8xf32, #tpu.memory_space<vmem>>, vector<2x8xf32>
    %cst_24 = arith.constant 0.000000e+00 : f32
    %52 = vector.broadcast %cst_24 : f32 to vector<2x8xf32>
    %53 = arith.cmpf oeq, %51, %52 : vector<2x8xf32>
    %cst_25 = arith.constant 0xFF800000 : f32
    %54 = vector.broadcast %cst_25 : f32 to vector<2x8xf32>
    %55 = arith.select %53, %54, %50 : vector<2x8xi1>, vector<2x8xf32>
    %cst_26 = arith.constant dense<0xFF800000> : vector<2xf32>
    %56 = vector.multi_reduction <maximumf>, %55, %cst_26 [1] : vector<2x8xf32> to vector<2xf32>
    %57 = vector.shape_cast %56 : vector<2xf32> to vector<2x1xf32>
    %58 = vector.broadcast %57 : vector<2x1xf32> to vector<2x8xf32>
    %59 = arith.subf %55, %58 : vector<2x8xf32>
    %60 = math.exp %59 : vector<2x8xf32>
    %cst_27 = arith.constant dense<0.000000e+00> : vector<2xf32>
    %61 = vector.multi_reduction <add>, %60, %cst_27 [1] : vector<2x8xf32> to vector<2xf32>
    %62 = vector.shape_cast %61 : vector<2xf32> to vector<2x1xf32>
    %63 = vector.broadcast %62 : vector<2x1xf32> to vector<2x8xf32>
    %64 = arith.divf %60, %63 : vector<2x8xf32>
    %65 = vector.shape_cast %64 : vector<2x8xf32> to vector<2x8x1xf32>
    %66 = vector.broadcast %65 : vector<2x8x1xf32> to vector<2x8x32xf32>
    %67 = arith.mulf %66, %0 : vector<2x8x32xf32>
    %cst_28 = arith.constant dense<0.000000e+00> : vector<2x32xf32>
    %68 = vector.multi_reduction <add>, %67, %cst_28 [1] : vector<2x8x32xf32> to vector<2x32xf32>
    %c0_29 = arith.constant 0 : index
    %c0_30 = arith.constant 0 : index
    %69 = vector.load %arg9[%c0_29, %c0_30] : memref<2x32xf32, #tpu.memory_space<vmem>>, vector<2x32xf32>
    tpu.vector_store %arg9[%c0_29, %c0_30], %68 {strides = array<i32>} : memref<2x32xf32, #tpu.memory_space<vmem>>, vector<2x32xf32>,
    return
  }
  func.func @transform_0(%arg0: i32) -> (i32, i32, i32) {
    %c0_i32 = arith.constant 0 : i32
    %c0_i32_0 = arith.constant 0 : i32
    %c0_i32_1 = arith.constant 0 : i32
    return %arg0, %c0_i32, %c0_i32_0 : i32, i32, i32
  }
  func.func @transform_1(%arg0: i32) -> (i32, i32) {
    %c0_i32 = arith.constant 0 : i32
    %c0_i32_0 = arith.constant 0 : i32
    return %arg0, %c0_i32 : i32, i32
  }
  func.func @transform_2(%arg0: i32) -> (i32, i32) {
    %c0_i32 = arith.constant 0 : i32
    %c0_i32_0 = arith.constant 0 : i32
    %c0_i32_1 = arith.constant 0 : i32
    return %c0_i32, %c0_i32_0 : i32, i32
  }
  func.func @transform_3(%arg0: i32) -> (i32, i32) {
    %c0_i32 = arith.constant 0 : i32
    %c0_i32_0 = arith.constant 0 : i32
    %c0_i32_1 = arith.constant 0 : i32
    return %c0_i32, %c0_i32_0 : i32, i32
  }
  func.func @transform_4(%arg0: i32) -> (i32, i32) {
    %c0_i32 = arith.constant 0 : i32
    %c0_i32_0 = arith.constant 0 : i32
    %c0_i32_1 = arith.constant 0 : i32
    return %c0_i32, %c0_i32_0 : i32, i32
  }
  func.func @transform_5(%arg0: i32) -> (i32, i32) {
    %c0_i32 = arith.constant 0 : i32
    %c0_i32_0 = arith.constant 0 : i32
    %c0_i32_1 = arith.constant 0 : i32
    return %c0_i32, %c0_i32_0 : i32, i32
  }
  func.func @transform_6(%arg0: i32) -> (i32, i32) {
    %c0_i32 = arith.constant 0 : i32
    %c0_i32_0 = arith.constant 0 : i32
    %c0_i32_1 = arith.constant 0 : i32
    return %c0_i32, %c0_i32_0 : i32, i32
  }
  func.func @transform_7(%arg0: i32) -> i32 {
    %c0_i32 = arith.constant 0 : i32
    %c0_i32_0 = arith.constant 0 : i32
    return %c0_i32 : i32
  }
  func.func @transform_8(%arg0: i32) -> (i32, i32) {
    %c0_i32 = arith.constant 0 : i32
    %c0_i32_0 = arith.constant 0 : i32
    return %arg0, %c0_i32 : i32, i32
  }
}

</mosaic_0001>

<bundles_post_ra>
// kernel: tpu_custom_call.1
= control target key start
LH: loop header
LB: loop body
LE: loop exit
PB: predicated region body
PF: predicated region fallthrough
CT: control target
= control target key end

     0   :  { %14 = vsyncpa [#allocation4], 0  ;;  %s494_s0 = inlined_call_operand.hbm [shape: f32[2,8,32], index: 0, kind: input, shape index: {}]   ;;  %s495_s1 = inlined_call_operand.vmem [shape: f32[2,8], index: 1, kind: input, shape index: {}]   ;;  %s496_s2 = inlined_call_operand.hbm [shape: bf16[32,32], index: 2, kind: input, shape index: {}]   ;;  %s497_s3 = inlined_call_operand.vmem [shape: f32[1,32], index: 3, kind: input, shape index: {}]   ;;  %s498_s4 = inlined_call_operand.vmem [shape: f32[1,32], index: 4, kind: input, shape index: {}]   ;;  %s499_s5 = inlined_call_operand.vmem [shape: f32[1,32], index: 5, kind: input, shape index: {}]   ;;  %s500_s6 = inlined_call_operand.vmem [shape: f32[1,32], index: 6, kind: input, shape index: {}]   ;;  %s501_s7 = inlined_call_operand.<no memory space> [shape: f32[1], index: 7, kind: input, shape index: {}]   ;;  %s502_s8 = inlined_call_operand.hbm [shape: f32[2,32], index: 8, kind: output, shape index: {}]  }
   0x1   :  { %15 = vsyncpa [#allocation7], 0 }
   0x2   :  { %16 = vsyncpa [#allocation5], 0  ;;  %s394_s27 = smov [#allocation3]  }
   0x3   :  { %s22_s28 = sshll.u32 %s394_s27, 4  ;;  %s23_s28 = int_to_ptr.vmem [resolvable:$true] %s22_s28 }
   0x4   :  { %s336_s29 = scalar_lea.vmem %s23_s28, 256  ;;  %p341_p1 = scmp.lt.s32.totalorder %s23_s28, %s23_s28 }
   0x5   :  { %p337_p0 = scmp.ne.s32.totalorder %s23_s28, %s336_s29  ;;  %p342_p2 = scmp.lt.s32.totalorder %s336_s29, %s336_s29 }
   0x7   :  { %p343_p3 = por %p342_p2, %p341_p1 }
   0x9   :  { %p344_p4 = pnand %p343_p3, %p337_p0 }
   0xb   :  { %347 = shalt.err (!%p344_p4)
}
   0xc   :  { %s395_s30 = smov 128   ;;  %s396_s9 = smov 8  }
   0xd   :  { %28 = dma.hbm_to_vmem [thread:$0]  %s494_s0, 256, %s23_s28, [#allocation4], %s395_s30, %s395_s30, %s396_s9  }
   0xe   :  { %s397_s12 = smov [#allocation6]  }
   0xf   :  { %s36_s13 = sshll.u32 %s397_s12, 4  ;;  %s37_s13 = int_to_ptr.vmem [resolvable:$true] %s36_s13 }
  0x10   :  { %s356_s14 = scalar_lea.vmem %s37_s13, 256  ;;  %p361_p6 = scmp.lt.s32.totalorder %s37_s13, %s37_s13 }
  0x11   :  { %p357_p5 = scmp.ne.s32.totalorder %s37_s13, %s356_s14  ;;  %p362_p7 = scmp.lt.s32.totalorder %s356_s14, %s356_s14 }
  0x13   :  { %p363_p8 = por %p362_p7, %p361_p6 }
  0x15   :  { %p364_p9 = pnand %p363_p8, %p357_p5 }
  0x17   :  { %367 = shalt.err (!%p364_p9)
}
  0x18   :  { %s398_s15 = smov 64   ;;  %s399_s16 = smov 4  }
  0x19   :  { %42 = dma.hbm_to_vmem [thread:$0]  %s496_s2, 256, %s37_s13, [#allocation7], %s398_s15, %s398_s15, %s399_s16  }
  0x1a   :  { %388 = dma.done.wait [#allocation4], 256  }
  0x1b   :  { %389 = vsyncadd [#allocation4], 4294967040 }
  0x1c   :  { %390 = dma.done.wait [#allocation7], 256  }
  0x1d   :  { %391 = vsyncadd [#allocation7], 4294967040  ;;  %v400_v0 = vmov 0.0   ;;  %vm401_vm0 = vmmov 0   ;;  %v314_v1 = vld [vmem:[#allocation6 + $0x8] sm:$0xff]   ;;  %v315_v2 = vld [vmem:[#allocation6] sm:$0xff]   ;;  %v209_v56 = vlaneseq  ;;  %v202_v59 = vstv %s501_s7 }
  0x1e   :  { %297 = vmatprep.subr.bf16.mxu0 %v400_v0  ;;  %301 = vmatprep.mubr.msk.bf16.mxu0 %vm401_vm0, %v400_v0  ;;  %v454_v3 = vld [vmem:[#allocation3] sm:$0xff]  ;;  %v456_v4 = vld [vmem:[#allocation3 + $0x8] sm:$0xff]  ;;  %vm86_vm1 = vcmask 261120   ;;  %vm219_vm2 = vcmask 1041409   ;;  %vm223_vm4 = vcmask 58368   ;;  %vm269_vm5 = vcmask 254976  }
  0x1f   :  { %298 = vmatpush3.bf16.msra.mxu0 %v314_v1  ;;  %v62_v5 = vpack.c.bf16 %v456_v4, %v454_v3  ;;  %v287_v6 = vld [vmem:[%s497_s3] ss:$0 sm:$0xff]  ;;  %v210_v57 = vand.u32 127, %v209_v56  ;;  %v212_v58 = vshrl.u32 %v209_v56, 7 }
  0x20   :  { %299 = vmatprep.subr.bf16.mxu0 %v400_v0  ;;  %v291_v32 = vld [vmem:[%s498_s4] ss:$0 sm:$0xff] }
  0x21   :  { %v292_v34 = vld [vmem:[%s499_s5] ss:$0 sm:$0xff]  ;;  %v213_v61 = vsub.s32 %v210_v57, %v212_v58 }
  0x22   :  { %v293_v46 = vld [vmem:[%s500_s6] ss:$0 sm:$0xff] }
  0x23   :  { %300 = vmatpush3.bf16.msra.mxu0 %v315_v2  ;;  %v205_v0 = vld [vmem:[%s495_s1] sm:$0x3]  ;;  %s402_s1 = smov [#allocation8]  }
  0x24   :  { %vm206_vm3 = vcmp.eq.f32.partialorder %v205_v0, 0.0  ;;  %s277_s7 = sshll.u32 %s402_s1, 4  ;;  %s278_s7 = int_to_ptr.vmem [resolvable:$true] %s277_s7 }
  0x25   :  { %s368_s25 = scalar_lea.vmem %s278_s7, 32  ;;  %p373_p11 = scmp.lt.s32.totalorder %s278_s7, %s278_s7 }
  0x26   :  { %302 = vmatmul.mubr.msk.bf16.vlgmr.msra.gmra.mxu0 %vm86_vm1, %v62_v5  ;;  %p369_p10 = scmp.ne.s32.totalorder %s278_s7, %s368_s25  ;;  %p374_p12 = scmp.lt.s32.totalorder %s368_s25, %s368_s25 }
  0x28   :  { %p375_p13 = por %p374_p12, %p373_p11 }
  0x2a   :  { %p376_p0 = pnand %p375_p13, %p369_p10 }
  0xe6   :  { %v124_v7 = vpop.f32.mrf.mxu0 }
  0xe7   :  { %v125_v8 = vadd.f32 %v287_v6, %v124_v7 }
  0xe8   :  { %v303_v9 = vpop.f32.mrf.mxu0 }
  0xe9   :  { %v131_v10 = vsel %vm86_vm1, %v125_v8, 0.0 }
  0xea   :  { %132 = vadd.xlane.f32.xlu0 %v131_v10  ;;  %v127_v11 = vpop.f32.mrf.mxu0 }
  0xeb   :  { %v128_v12 = vadd.f32 %v287_v6, %v127_v11 }
  0xec   :  { %v304_v13 = vpop.f32.mrf.mxu0 }
  0xed   :  { %v134_v14 = vsel %vm86_vm1, %v128_v12, 0.0 }
  0xee   :  { %135 = vadd.xlane.f32.xlu0 %v134_v14 }
 0x173   :  { %v133_v15 = vpop.xlane.xlu0 %132 }
 0x174   :  { %v138_v16 = vmul.f32 0.03125, %v133_v15  ;;  %v244_v15 = vsub.s32 1, %v212_v58 }
 0x176   :  { %v140_v17 = vsub.f32 %v125_v8, %v138_v16  ;;  %v237_v16 = vsub.s32 0, %v212_v58 }
 0x177   :  { %v136_v18 = vpop.xlane.xlu0 %135 }
 0x178   :  { %v139_v19 = vmul.f32 0.03125, %v136_v18  ;;  %v142_v20 = vmul.f32 %v140_v17, %v140_v17 }
 0x17a   :  { %v141_v21 = vsub.f32 %v128_v12, %v139_v19  ;;  %v144_v22 = vsel %vm86_vm1, %v142_v20, 0.0 }
 0x17b   :  { %145 = vadd.xlane.f32.xlu1 %v144_v22 }
 0x17c   :  { %v143_v23 = vmul.f32 %v141_v21, %v141_v21 }
 0x17e   :  { %v147_v24 = vsel %vm86_vm1, %v143_v23, 0.0 }
 0x17f   :  { %148 = vadd.xlane.f32.xlu1 %v147_v24 }
 0x204   :  { %v146_v25 = vpop.xlane.xlu1 %145 }
 0x205   :  { %v150_v26 = vmul.f32 0.03125, %v146_v25 }
 0x207   :  { %v152_v27 = vadd.f32 1e-05, %v150_v26 }
 0x208   :  { %v149_v28 = vpop.xlane.xlu1 %148 }
 0x209   :  { %316 = vrsqrt.f32 %v152_v27  ;;  %v151_v29 = vmul.f32 0.03125, %v149_v28 }
 0x20b   :  { %v153_v30 = vadd.f32 1e-05, %v151_v29 }
 0x20d   :  { %318 = vrsqrt.f32 %v153_v30 }
 0x216   :  { %v317_v31 = vpop.eup %316 }
 0x217   :  { %v156_v33 = vmul.f32 %v317_v31, %v140_v17 }
 0x219   :  { %v165_v35 = vmul.f32 %v291_v32, %v156_v33 }
 0x21a   :  { %v319_v36 = vpop.eup %318 }
 0x21b   :  { %v174_v37 = vadd.f32 %v292_v34, %v165_v35  ;;  %v157_v38 = vmul.f32 %v319_v36, %v141_v21 }
 0x21d   :  { %v178_v39 = vmul.f32 0.70710677, %v174_v37  ;;  %v166_v40 = vmul.f32 %v291_v32, %v157_v38  ;;  %v176_v44 = vmul.f32 0.5, %v174_v37 }
 0x21f   :  { %320 = verf.f32 %v178_v39  ;;  %v175_v41 = vadd.f32 %v292_v34, %v166_v40 }
 0x221   :  { %v179_v42 = vmul.f32 0.70710677, %v175_v41  ;;  %v177_v50 = vmul.f32 0.5, %v175_v41 }
 0x223   :  { %322 = verf.f32 %v179_v42 }
 0x22c   :  { %v321_v43 = vpop.eup %320 }
 0x22d   :  { %v182_v45 = vadd.f32 1.0, %v321_v43 }
 0x22f   :  { %v184_v47 = vmul.f32 %v182_v45, %v176_v44 }
 0x230   :  { %v323_v48 = vpop.eup %322 }
 0x231   :  { %v193_v49 = vmul.f32 %v293_v46, %v184_v47  ;;  %v183_v51 = vadd.f32 1.0, %v323_v48 }
 0x233   :  { %v195_v52 = vsel %vm86_vm1, %v193_v49, 0.0  ;;  %v185_v53 = vmul.f32 %v183_v51, %v177_v50 }
 0x234   :  { %196 = vadd.xlane.f32.xlu0 %v195_v52 }
 0x235   :  { %v194_v54 = vmul.f32 %v293_v46, %v185_v53 }
 0x237   :  { %v198_v55 = vsel %vm86_vm1, %v194_v54, 0.0 }
 0x238   :  { %199 = vadd.xlane.f32.xlu1 %v198_v55 }
 0x2bd   :  { %v197_v60 = vpop.xlane.xlu0 %196 }
 0x2be   :  { %v203_v62 = vadd.f32 %v202_v59, %v197_v60 }
 0x2c0   :  { %v214_v2 = vrot.slane %v203_v62, %v213_v61 }
 0x2c1   :  { %v200_v63 = vpop.xlane.xlu1 %199 }
 0x2c2   :  { %v204_v1 = vadd.f32 %v202_v59, %v200_v63 }
 0x2c4   :  { %v218_v5 = vrot.slane %v204_v1, %v213_v61 }
 0x2c6   :  { %v220_v6 = vsel %vm219_vm2, %v218_v5, %v214_v2 }
 0x2c7   :  { %v222_v7 = vsel %vm206_vm3, -inf, %v220_v6 }
 0x2c8   :  { %v224_v8 = vsel %vm223_vm4, %v222_v7, -inf }
 0x2c9   :  { %225 = vmax.xlane.f32.xlu0 %v224_v8 }
 0x352   :  { %v226_v9 = vpop.xlane.xlu0 %225 }
 0x353   :  { %v227_v10 = vsub.f32 %v222_v7, %v226_v9 }
 0x355   :  { %v228_v11 = vmul.f32 1.442695, %v227_v10 }
 0x357   :  { %324 = vpow2.f32 %v228_v11 }
 0x364   :  { %v325_v12 = vpop.eup %324 }
 0x365   :  { %v230_v13 = vsel %vm223_vm4, %v325_v12, 0.0 }
 0x366   :  { %231 = vadd.xlane.f32.xlu1 %v230_v13 }
 0x3ef   :  { %v232_v14 = vpop.xlane.xlu1 %231 }
 0x3f0   :  { %326 = vrcp.f32 %v232_v14 }
 0x3fd   :  { %v327_v17 = vpop.eup %326 }
 0x3fe   :  { %v234_v18 = vmul.f32 %v327_v17, %v325_v12 }
 0x400   :  { %v245_v19 = vrot.slane %v234_v18, %v244_v15  ;;  %v238_v20 = vrot.slane %v234_v18, %v237_v16 }
 0x402   :  { %247 = vbcast.lane.b32.xlu1 %v245_v19, 256  ;;  %240 = vbcast.lane.b32.xlu0 %v238_v20, 256 }
 0x474   :  { %v248_v21 = vpop.permute.xlu1 %247  ;;  %v241_v22 = vpop.permute.xlu0 %240 }
 0x475   :  { %v250_v23 = vmul.f32 %v248_v21, %v456_v4  ;;  %v249_v24 = vmul.f32 %v241_v22, %v454_v3 }
 0x477   :  { %v258_v25 = vsel %vm86_vm1, %v250_v23, 0.0  ;;  %v251_v26 = vsel %vm86_vm1, %v249_v24, 0.0 }
 0x478   :  { %v259_v27 = vrot.slane %v258_v25, 4  ;;  %v252_v28 = vrot.slane %v251_v26, 4 }
 0x47a   :  { %v260_v29 = vadd.f32 %v259_v27, %v258_v25  ;;  %v253_v30 = vadd.f32 %v252_v28, %v251_v26 }
 0x47c   :  { %v261_v31 = vrot.slane %v260_v29, 2  ;;  %v254_v32 = vrot.slane %v253_v30, 2 }
 0x47e   :  { %v262_v33 = vadd.f32 %v261_v31, %v260_v29  ;;  %v255_v34 = vadd.f32 %v254_v32, %v253_v30 }
 0x480   :  { %v263_v35 = vrot.slane %v262_v33, 1  ;;  %v256_v36 = vrot.slane %v255_v34, 1 }
 0x482   :  { %v264_v37 = vadd.f32 %v263_v35, %v262_v33  ;;  %v257_v4 = vadd.f32 %v256_v36, %v255_v34 }
 0x484   :  { %v267_v3 = vsel %vm219_vm2, %v264_v37, %v257_v4 }
 0x485   :  { %270 = vst.msk [vmem:[#allocation8] sm:$0x3] %vm269_vm5, %v267_v3 }
 0x486   :  { %379 = shalt.err (!%p376_p0)
}
 0x487   :  { %280 = dma.vmem_to_hbm [thread:$0]  %s278_s7, 32, %s502_s8, [#allocation5]  }
 0x488   :  { %392 = dma.done.wait [#allocation5], 32  }
 0x489   :  { %393 = vsyncadd [#allocation5], 4294967264 }
 0x48a   :  { %284 = vsyncpa [#allocation4], 1 }
 0x48b   :  { %285 = vsyncpa [#allocation7], 1 }
 0x48c   :  { %286 = vsyncpa [#allocation5], 1 }

</bundles_post_ra>
